<compile_context>
chip_gen: v5e
topology: v5e:2x2
jax: 0.10.0
libtpu: 0.0.40
codegen_flags: <defaults>
</compile_context>

<pallas_src>
from functools import partial

import jax
import jax.numpy as jnp
from jax.experimental import pallas as pl
from jax.experimental.pallas import tpu as pltpu

_LANE = 128      # lane width: intermediate/output feature dims padded to this
_SUBLANE = 8     # f32 sublane packing: batch tile / first-layer Din multiple


def _round_up(n, m):
    return ((n + m - 1) // m) * m


def _cdiv(a, b):
    return -(-a // b)


def _apply_activation(y, name):
    if name == "identity":
        return y
    if name == "relu":
        return jnp.maximum(y, 0.0)
    if name == "tanh":
        return jnp.tanh(y)
    if name == "sigmoid":
        return jax.nn.sigmoid(y)
    if name == "leaky_relu":
        return jnp.where(y > 0, y, 0.01 * y)
    raise ValueError(f"unsupported activation: {name}")


def _fused_mlp_kernel(*refs, acts, compute_dtype):
    # refs = (x_ref, w0, b0, w1, b1, ..., w_{L-1}, b_{L-1}, o_ref)
    n_layers = len(acts)
    x_ref = refs[0]
    o_ref = refs[1 + 2 * n_layers]
    h = x_ref[...].astype(jnp.float32)
    for j, act in enumerate(acts):
        w_ref = refs[1 + 2 * j]
        b_ref = refs[2 + 2 * j]
        lhs = h.astype(compute_dtype)                       # bf16 MXU inputs
        h = jnp.dot(lhs, w_ref[...],
                    preferred_element_type=jnp.float32)     # f32 accumulation
        h = h + b_ref[...].astype(jnp.float32)              # f32 bias-add (VPU)
        h = _apply_activation(h, act)                        # f32 activation (VPU/EUP)
    o_ref[...] = h.astype(o_ref.dtype)


def fused_mlp(x_pad, padded_params, acts, tm, out_dtype, compute_dtype):
    """One pallas_call for the whole MLP.

    x_pad: (B_pad, Din8) with B_pad a multiple of tm, Din8 a multiple of 8 (the
    x block spans the full feature dim, so it need not be 128-wide).  All
    hidden/output feature dims of the padded weights are multiples of 128.
    """
    b_pad, din8 = x_pad.shape
    dout_pad = padded_params[-1][0].shape[1]
    grid = (b_pad // tm,)

    in_specs = [pl.BlockSpec((tm, din8), lambda i: (i, 0))]
    flat_inputs = [x_pad]
    for w, b in padded_params:
        dw_in, dw_out = w.shape
        # Weights/biases are VMEM-resident across the whole batch grid
        # (constant index_map -> fetched once).
        # TODO(synk): pipeline_mode=pl.Buffered(1) here would halve the
        # resident-weight VMEM for large hidden sizes; negligible (~100 KiB)
        # for this config, so it is left at the default to minimize risk.
        in_specs.append(pl.BlockSpec((dw_in, dw_out), lambda i: (0, 0)))
        in_specs.append(pl.BlockSpec((1, dw_out), lambda i: (0, 0)))
        flat_inputs += [w, b]

    # Lane-dense (multiple-of-128) output block -> unmasked vst.
    # TODO(synk): if the x/out DMA is still exposed at large tm, deepen with
    # pipeline_mode=pl.Buffered(3) on these two specs and sweep.
    out_specs = pl.BlockSpec((tm, dout_pad), lambda i: (i, 0))

    # --- cost estimate -------------------------------------------------------
    flops = 2 * b_pad * sum(w.shape[0] * w.shape[1] for w, _ in padded_params)
    transcendentals = sum(
        b_pad * w.shape[1]
        for (w, _), act in zip(padded_params, acts)
        if act in ("tanh", "sigmoid"))
    bytes_accessed = int(
        x_pad.size * x_pad.dtype.itemsize
        + b_pad * dout_pad * jnp.dtype(out_dtype).itemsize
        + sum(w.size * w.dtype.itemsize + b.size * b.dtype.itemsize
              for w, b in padded_params))

    # --- VMEM budget: derived from the actual per-tile footprint -------------
    f32_bytes = 4
    weight_bytes = int(sum(w.size * w.dtype.itemsize + b.size * b.dtype.itemsize
                           for w, b in padded_params))
    max_feat = max([din8] + [w.shape[1] for w, _ in padded_params])
    footprint = (2 * tm * din8 * f32_bytes        # x tiles (double-buffered)
                 + 2 * tm * dout_pad * f32_bytes  # out tiles (double-buffered)
                 + 2 * weight_bytes               # resident weights (dbl-buffered default)
                 + 2 * tm * max_feat * f32_bytes) # f32 intermediates staged via VMEM
    vmem_limit = int(min(96 * 2**20, max(32 * 2**20, 2 * footprint)))

    return pl.pallas_call(
        partial(_fused_mlp_kernel, acts=tuple(acts), compute_dtype=compute_dtype),
        out_shape=jax.ShapeDtypeStruct((b_pad, dout_pad), out_dtype),
        grid=grid,
        in_specs=in_specs,
        out_specs=out_specs,
        compiler_params=pltpu.CompilerParams(
            dimension_semantics=("parallel",),   # megacore-shard batch on v7x
            vmem_limit_bytes=vmem_limit),
        cost_estimate=pl.CostEstimate(
            flops=int(flops),
            transcendentals=int(transcendentals),
            bytes_accessed=bytes_accessed),
    )(*flat_inputs)


class PlainMLPPallas:
    """JAX/Pallas mirror of harl PlainMLP: Linear + activation per layer, final
    layer uses `final_activation_func` (default identity).  Whole forward pass
    is one fused Pallas kernel."""

    def __init__(self, sizes, activation_func="relu",
                 final_activation_func="identity", key=None,
                 dtype=jnp.float32, compute_dtype=jnp.bfloat16,
                 max_batch_tile=1024):
        # max_batch_tile=1024: per-tile x/out footprint with 128-wide padded
        # features is ~1 MiB double-buffered, leaving large headroom on all of
        # v5e/v6e (128 MiB VMEM) and v7x (64 MiB) while staying past the
        # measured >=85%-of-roofline tile size.
        if key is None:
            key = jax.random.PRNGKey(0)
        self.sizes = list(sizes)
        self.dtype = dtype                       # param / IO dtype (f32)
        self.compute_dtype = compute_dtype       # MXU input dtype (bf16 default)
        self.max_batch_tile = max_batch_tile
        n_layers = len(sizes) - 1
        self.acts = [
            activation_func if j < n_layers - 1 else final_activation_func
            for j in range(n_layers)
        ]
        # First-layer input dim only needs sublane (8) alignment; hidden and
        # output dims are padded to 128 lanes (lane-dense matmuls / stores).
        # TODO(synk): for genuinely MXU-bound hidden sizes >128, pad hidden
        # dims to 256 on v6e/v7x (2x256^2 MXU); pointless for these toy sizes.
        self.din8 = _round_up(sizes[0], _SUBLANE)
        self.padded_sizes = [self.din8] + [_round_up(s, _LANE) for s in sizes[1:]]

        self.params = []         # unpadded f32 (w (Din,Dout), b (Dout,)) — reference
        self.padded_params = []  # zero-padded, w in compute_dtype, b in f32
        for j in range(n_layers):
            key, wk, bk = jax.random.split(key, 3)
            fan_in = sizes[j]
            bound = 1.0 / (fan_in ** 0.5)  # matches nn.Linear default init bounds
            w = jax.random.uniform(wk, (sizes[j], sizes[j + 1]),
                                   minval=-bound, maxval=bound, dtype=dtype)
            b = jax.random.uniform(bk, (sizes[j + 1],),
                                   minval=-bound, maxval=bound, dtype=dtype)
            self.params.append((w, b))
            w_pad = jnp.zeros((self.padded_sizes[j], self.padded_sizes[j + 1]),
                              dtype=dtype).at[:sizes[j], :sizes[j + 1]].set(w)
            b_pad = jnp.zeros((1, self.padded_sizes[j + 1]),
                              dtype=dtype).at[0, :sizes[j + 1]].set(b)
            # Zero rows/cols in padded regions keep the padding exact even
            # after nonlinearities (padded activation columns hit zero rows).
            self.padded_params.append((w_pad.astype(compute_dtype), b_pad))

    def _choose_tiling(self, batch):
        # Enough steps to keep each tile <= max_batch_tile, and >= 2 steps when
        # the batch allows so v7x's two TensorCores both get work; tm sized to
        # cdiv(B, n_steps) so the last tile is mostly real rows (minimal pad
        # waste), rounded up to the f32 sublane multiple.
        n_steps = max(1, _cdiv(batch, self.max_batch_tile))
        if n_steps < 2 and batch >= 2 * _SUBLANE:
            n_steps = 2
        tm = _round_up(_cdiv(batch, n_steps), _SUBLANE)
        b_pad = _round_up(batch, tm)
        return tm, b_pad

    def __call__(self, x):
        B, Din = x.shape
        assert Din == self.sizes[0], "input feature dim mismatch"
        tm, b_pad = self._choose_tiling(B)
        if B == b_pad and Din == self.din8 and x.dtype == self.dtype:
            x_in = x                                    # no wrapper copy at all
        else:
            x_in = jnp.pad(x.astype(self.dtype),
                           ((0, b_pad - B), (0, self.din8 - Din)))
        y_pad = fused_mlp(x_in, self.padded_params, self.acts, tm,
                          self.dtype, self.compute_dtype)
        return y_pad[:B, :self.sizes[-1]]


def plain_mlp_ref(x, params, acts):
    """Pure-JAX f32 reference for correctness checking (unpadded params)."""
    for (w, b), act in zip(params, acts):
        x = x @ w + b
        x = _apply_activation(x, act)
    return x


if __name__ == "__main__":
    key = jax.random.PRNGKey(0)
    kx, kx2, kx3, kp, kp3 = jax.random.split(key, 5)

    sizes = [32, 64, 64, 16]  # PlainMLP(sizes, 'relu') -> final identity

    # Case 1: exact-numerics f32 compute path, tiny batch (grid=(1,)).
    mlp_f32 = PlainMLPPallas(sizes, activation_func="relu",
                             final_activation_func="identity", key=kp,
                             compute_dtype=jnp.float32)
    batch = 8
    x = jax.random.normal(kx, (batch, sizes[0]), dtype=jnp.float32)
    y = jax.block_until_ready(mlp_f32(x))
    y_ref = plain_mlp_ref(x, mlp_f32.params, mlp_f32.acts)
    assert y.shape == (batch, sizes[-1])
    assert jnp.allclose(y, y_ref, atol=1e-5, rtol=1e-5), "mismatch vs reference (f32, B=8)"

    # Case 2: default bf16 MXU path, batch split into >= 2 tiles
    # (exercises the tiled/parallel grid; bf16-input-rounding tolerance).
    mlp_bf16 = PlainMLPPallas(sizes, activation_func="relu",
                              final_activation_func="identity", key=kp)
    batch2 = 48  # _choose_tiling -> tm=24, grid=(2,)
    x2 = jax.random.normal(kx2, (batch2, sizes[0]), dtype=jnp.float32)
    y2 = jax.block_until_ready(mlp_bf16(x2))
    y2_ref = plain_mlp_ref(x2, mlp_bf16.params, mlp_bf16.acts)
    assert y2.shape == (batch2, sizes[-1])
    assert jnp.allclose(y2, y2_ref, atol=1e-1, rtol=1e-1), "mismatch vs reference (bf16, B=48)"

    # Case 3: Din not a multiple of 8 + tanh hidden activation, f32 compute
    # (exercises the first-layer 8-row padding path with tight tolerance).
    sizes3 = [20, 40, 12]
    mlp3 = PlainMLPPallas(sizes3, activation_func="tanh",
                          final_activation_func="identity", key=kp3,
                          compute_dtype=jnp.float32)
    x3 = jax.random.normal(kx3, (8, sizes3[0]), dtype=jnp.float32)
    y3 = jax.block_until_ready(mlp3(x3))
    y3_ref = plain_mlp_ref(x3, mlp3.params, mlp3.acts)
    assert y3.shape == (8, sizes3[-1])
    assert jnp.allclose(y3, y3_ref, atol=1e-5, rtol=1e-5), "mismatch vs reference (f32, Din=20)"

    print("KERNEL_OK")
</pallas_src>

<mosaic_0001>
module attributes {stable_mosaic.version = 11 : i64} {
  func.func @_fused_mlp_kernel(%arg0: i32, %arg1: memref<8x32xf32, #tpu.memory_space<vmem>>, %arg2: memref<32x128xf32, #tpu.memory_space<vmem>>, %arg3: memref<1x128xf32, #tpu.memory_space<vmem>>, %arg4: memref<128x128xf32, #tpu.memory_space<vmem>>, %arg5: memref<1x128xf32, #tpu.memory_space<vmem>>, %arg6: memref<128x128xf32, #tpu.memory_space<vmem>>, %arg7: memref<1x128xf32, #tpu.memory_space<vmem>>, %arg8: memref<8x128xf32, #tpu.memory_space<vmem>>) attributes {dimension_semantics = [#tpu.dimension_semantics<parallel>], iteration_bounds = array<i64: 1>, scalar_prefetch = 0 : i64, scratch_operands = 0 : i64, tpu.core_type = #tpu.core_type<tc>, window_params = [{transform_indices = @transform_0, window_bounds = array<i64: 8, 32>}, {pipeline_mode = #tpu.pipeline_mode<synchronous>, transform_indices = @transform_1, window_bounds = array<i64: 32, 128>}, {pipeline_mode = #tpu.pipeline_mode<synchronous>, transform_indices = @transform_2, window_bounds = array<i64: 1, 128>}, {pipeline_mode = #tpu.pipeline_mode<synchronous>, transform_indices = @transform_3, window_bounds = array<i64: 128, 128>}, {pipeline_mode = #tpu.pipeline_mode<synchronous>, transform_indices = @transform_4, window_bounds = array<i64: 1, 128>}, {pipeline_mode = #tpu.pipeline_mode<synchronous>, transform_indices = @transform_5, window_bounds = array<i64: 128, 128>}, {pipeline_mode = #tpu.pipeline_mode<synchronous>, transform_indices = @transform_6, window_bounds = array<i64: 1, 128>}, {transform_indices = @transform_7, window_bounds = array<i64: 8, 128>}]} {
    %c0 = arith.constant 0 : index
    %c0_0 = arith.constant 0 : index
    %0 = vector.load %arg1[%c0, %c0_0] : memref<8x32xf32, #tpu.memory_space<vmem>>, vector<8x32xf32>
    %c0_1 = arith.constant 0 : index
    %c0_2 = arith.constant 0 : index
    %1 = vector.load %arg2[%c0_1, %c0_2] : memref<32x128xf32, #tpu.memory_space<vmem>>, vector<32x128xf32>
    %cst = arith.constant dense<0.000000e+00> : vector<8x128xf32>
    %2 = tpu.matmul %0, %1, %cst {dimension_numbers = #tpu.dot_dimension_numbers<[1], [0], [0], [1], [0, 0, 1, 1], [], []>} : vector<8x32xf32>, vector<32x128xf32>, vector<8x128xf32> -> vector<8x128xf32>
    %c0_3 = arith.constant 0 : index
    %c0_4 = arith.constant 0 : index
    %3 = vector.load %arg3[%c0_3, %c0_4] : memref<1x128xf32, #tpu.memory_space<vmem>>, vector<1x128xf32>
    %4 = vector.broadcast %3 : vector<1x128xf32> to vector<8x128xf32>
    %5 = arith.addf %2, %4 : vector<8x128xf32>
    %cst_5 = arith.constant 0.000000e+00 : f32
    %6 = vector.broadcast %cst_5 : f32 to vector<8x128xf32>
    %7 = arith.maximumf %5, %6 : vector<8x128xf32>
    %c0_6 = arith.constant 0 : index
    %c0_7 = arith.constant 0 : index
    %8 = vector.load %arg4[%c0_6, %c0_7] : memref<128x128xf32, #tpu.memory_space<vmem>>, vector<128x128xf32>
    %cst_8 = arith.constant dense<0.000000e+00> : vector<8x128xf32>
    %9 = tpu.matmul %7, %8, %cst_8 {dimension_numbers = #tpu.dot_dimension_numbers<[1], [0], [0], [1], [0, 0, 1, 1], [], []>} : vector<8x128xf32>, vector<128x128xf32>, vector<8x128xf32> -> vector<8x128xf32>
    %c0_9 = arith.constant 0 : index
    %c0_10 = arith.constant 0 : index
    %10 = vector.load %arg5[%c0_9, %c0_10] : memref<1x128xf32, #tpu.memory_space<vmem>>, vector<1x128xf32>
    %11 = vector.broadcast %10 : vector<1x128xf32> to vector<8x128xf32>
    %12 = arith.addf %9, %11 : vector<8x128xf32>
    %cst_11 = arith.constant 0.000000e+00 : f32
    %13 = vector.broadcast %cst_11 : f32 to vector<8x128xf32>
    %14 = arith.maximumf %12, %13 : vector<8x128xf32>
    %c0_12 = arith.constant 0 : index
    %c0_13 = arith.constant 0 : index
    %15 = vector.load %arg6[%c0_12, %c0_13] : memref<128x128xf32, #tpu.memory_space<vmem>>, vector<128x128xf32>
    %cst_14 = arith.constant dense<0.000000e+00> : vector<8x128xf32>
    %16 = tpu.matmul %14, %15, %cst_14 {dimension_numbers = #tpu.dot_dimension_numbers<[1], [0], [0], [1], [0, 0, 1, 1], [], []>} : vector<8x128xf32>, vector<128x128xf32>, vector<8x128xf32> -> vector<8x128xf32>
    %c0_15 = arith.constant 0 : index
    %c0_16 = arith.constant 0 : index
    %17 = vector.load %arg7[%c0_15, %c0_16] : memref<1x128xf32, #tpu.memory_space<vmem>>, vector<1x128xf32>
    %18 = vector.broadcast %17 : vector<1x128xf32> to vector<8x128xf32>
    %19 = arith.addf %16, %18 : vector<8x128xf32>
    %c0_17 = arith.constant 0 : index
    %c0_18 = arith.constant 0 : index
    %20 = vector.load %arg8[%c0_17, %c0_18] : memref<8x128xf32, #tpu.memory_space<vmem>>, vector<8x128xf32>
    tpu.vector_store %arg8[%c0_17, %c0_18], %19 {strides = array<i32>} : memref<8x128xf32, #tpu.memory_space<vmem>>, vector<8x128xf32>,
    return
  }
  func.func @transform_0(%arg0: i32) -> (i32, i32) {
    %c0_i32 = arith.constant 0 : i32
    %c0_i32_0 = arith.constant 0 : i32
    return %arg0, %c0_i32 : i32, i32
  }
  func.func @transform_1(%arg0: i32) -> (i32, i32) {
    %c0_i32 = arith.constant 0 : i32
    %c0_i32_0 = arith.constant 0 : i32
    %c0_i32_1 = arith.constant 0 : i32
    return %c0_i32, %c0_i32_0 : i32, i32
  }
  func.func @transform_2(%arg0: i32) -> (i32, i32) {
    %c0_i32 = arith.constant 0 : i32
    %c0_i32_0 = arith.constant 0 : i32
    %c0_i32_1 = arith.constant 0 : i32
    return %c0_i32, %c0_i32_0 : i32, i32
  }
  func.func @transform_3(%arg0: i32) -> (i32, i32) {
    %c0_i32 = arith.constant 0 : i32
    %c0_i32_0 = arith.constant 0 : i32
    %c0_i32_1 = arith.constant 0 : i32
    return %c0_i32, %c0_i32_0 : i32, i32
  }
  func.func @transform_4(%arg0: i32) -> (i32, i32) {
    %c0_i32 = arith.constant 0 : i32
    %c0_i32_0 = arith.constant 0 : i32
    %c0_i32_1 = arith.constant 0 : i32
    return %c0_i32, %c0_i32_0 : i32, i32
  }
  func.func @transform_5(%arg0: i32) -> (i32, i32) {
    %c0_i32 = arith.constant 0 : i32
    %c0_i32_0 = arith.constant 0 : i32
    %c0_i32_1 = arith.constant 0 : i32
    return %c0_i32, %c0_i32_0 : i32, i32
  }
  func.func @transform_6(%arg0: i32) -> (i32, i32) {
    %c0_i32 = arith.constant 0 : i32
    %c0_i32_0 = arith.constant 0 : i32
    %c0_i32_1 = arith.constant 0 : i32
    return %c0_i32, %c0_i32_0 : i32, i32
  }
  func.func @transform_7(%arg0: i32) -> (i32, i32) {
    %c0_i32 = arith.constant 0 : i32
    %c0_i32_0 = arith.constant 0 : i32
    return %arg0, %c0_i32 : i32, i32
  }
}

</mosaic_0001>

<bundles_post_ra>
// kernel: tpu_custom_call.1
= control target key start
LH: loop header
LB: loop body
LE: loop exit
PB: predicated region body
PF: predicated region fallthrough
CT: control target
= control target key end

     0   :  { %12 = vsyncpa [#allocation3], 0  ;;  %s433_s0 = inlined_call_operand.hbm [shape: f32[8,32], index: 0, kind: input, shape index: {}]   ;;  %s434_s1 = inlined_call_operand.hbm [shape: f32[32,128], index: 1, kind: input, shape index: {}]   ;;  %s435_s2 = inlined_call_operand.vmem [shape: f32[1,128], index: 2, kind: input, shape index: {}]   ;;  %s436_s3 = inlined_call_operand.hbm [shape: f32[128,128], index: 3, kind: input, shape index: {}]   ;;  %s437_s4 = inlined_call_operand.vmem [shape: f32[1,128], index: 4, kind: input, shape index: {}]   ;;  %s438_s5 = inlined_call_operand.hbm [shape: f32[128,128], index: 5, kind: input, shape index: {}]   ;;  %s439_s6 = inlined_call_operand.vmem [shape: f32[1,128], index: 6, kind: input, shape index: {}]   ;;  %s440_s7 = inlined_call_operand.hbm [shape: f32[8,128], index: 7, kind: output, shape index: {}]  }
   0x1   :  { %13 = vsyncpa [#allocation6], 0 }
   0x2   :  { %14 = vsyncpa [#allocation9], 0  ;;  %s31_s26 = sshll.u32 %s434_s1, 4  ;;  %s32_s26 = int_to_ptr.hbm [resolvable:$true] %s31_s26 }
   0x3   :  { %15 = vsyncpa [#allocation4], 0  ;;  %s362_s27 = smov [#allocation5]   ;;  %s21_s8 = sshll.u32 %s433_s0, 4  ;;  %s22_s8 = int_to_ptr.hbm [resolvable:$true] %s21_s8 }
   0x4   :  { %s33_s28 = sshll.u32 %s362_s27, 4  ;;  %s363_s9 = smov 128   ;;  %s34_s28 = int_to_ptr.vmem [resolvable:$true] %s33_s28 }
   0x5   :  { %s364_s10 = smov 8   ;;  %s365_s11 = smov [#allocation2]  }
   0x6   :  { %39 = dma.hbm_to_vmem [thread:$0]  %s32_s26, 512, %s34_s28, [#allocation6], %s363_s9, %s363_s9, %s364_s10  }
   0x7   :  { %s23_s12 = sshll.u32 %s365_s11, 4  ;;  %s46_s15 = sshll.u32 %s436_s3, 4  ;;  %s24_s12 = int_to_ptr.vmem [resolvable:$true] %s23_s12  ;;  %s47_s15 = int_to_ptr.hbm [resolvable:$true] %s46_s15 }
   0x8   :  { %26 = dma.hbm_to_vmem [thread:$0]  %s22_s8, 128, %s24_s12, [#allocation3]  }
   0x9   :  { %s61_s17 = sshll.u32 %s438_s5, 4  ;;  %s366_s18 = smov [#allocation7]   ;;  %s62_s17 = int_to_ptr.hbm [resolvable:$true] %s61_s17 }
   0xa   :  { %s48_s19 = sshll.u32 %s366_s18, 4  ;;  %s367_s0 = smov [#allocation8]   ;;  %s49_s19 = int_to_ptr.vmem [resolvable:$true] %s48_s19 }
   0xb   :  { %54 = dma.hbm_to_vmem [thread:$0]  %s47_s15, 2048, %s49_s19, [#allocation6], %s363_s9, %s363_s9, %s364_s10  }
   0xc   :  { %s63_s20 = sshll.u32 %s367_s0, 4  ;;  %s64_s20 = int_to_ptr.vmem [resolvable:$true] %s63_s20 }
   0xd   :  { %69 = dma.hbm_to_vmem [thread:$0]  %s62_s17, 2048, %s64_s20, [#allocation9], %s363_s9, %s363_s9, %s364_s10  }
   0xe   :  { %354 = dma.done.wait [#allocation3], 128  }
   0xf   :  { %355 = vsyncadd [#allocation3], 4294967168 }
  0x10   :  { %356 = dma.done.wait [#allocation6], 2560  }
  0x11   :  { %357 = vsyncadd [#allocation6], 4294964736 }
  0x12   :  { %358 = dma.done.wait [#allocation9], 2048  }
  0x13   :  { %359 = vsyncadd [#allocation9], 4294965248  ;;  %v92_v0 = vld [vmem:[#allocation5 + $0x18] sm:$0xff]  ;;  %v91_v1 = vld [vmem:[#allocation5 + $0x10] sm:$0xff]  ;;  %vm97_vm0 = vcmask 261120   ;;  %s368_s24 = smov [#allocation10]  }
  0x14   :  { %113 = vmatpush.msra.mxu0 %v92_v0  ;;  %v137_v2 = vld [vmem:[#allocation7 + $0x78] sm:$0xff]  ;;  %v90_v3 = vld [vmem:[#allocation5 + $0x8] sm:$0xff]  ;;  %v136_v4 = vld [vmem:[#allocation7 + $0x70] sm:$0xff]  ;;  %s209_s25 = sshll.u32 %s368_s24, 4  ;;  %s211_s28 = sshll.u32 %s440_s7, 4  ;;  %s210_s25 = int_to_ptr.vmem [resolvable:$true] %s209_s25  ;;  %s212_s28 = int_to_ptr.hbm [resolvable:$true] %s211_s28 }
  0x15   :  { %142 = vmatpush.msra.mxu1 %v137_v2  ;;  %v135_v5 = vld [vmem:[#allocation7 + $0x68] sm:$0xff]  ;;  %v89_v6 = vld [vmem:[#allocation5] sm:$0xff]  ;;  %v88_v7 = vld [vmem:[#allocation2] sm:$0xff] }
  0x16   :  { %114 = vmatpush.msra.mxu0 %v91_v1  ;;  %v134_v8 = vld [vmem:[#allocation7 + $0x60] sm:$0xff]  ;;  %v133_v9 = vld [vmem:[#allocation7 + $0x58] sm:$0xff]  ;;  %v132_v10 = vld [vmem:[#allocation7 + $0x50] sm:$0xff] }
  0x17   :  { %143 = vmatpush.msra.mxu1 %v136_v4  ;;  %v131_v11 = vld [vmem:[#allocation7 + $0x48] sm:$0xff]  ;;  %v130_v12 = vld [vmem:[#allocation7 + $0x40] sm:$0xff]  ;;  %v129_v13 = vld [vmem:[#allocation7 + $0x38] sm:$0xff] }
  0x18   :  { %115 = vmatpush.msra.mxu0 %v90_v3  ;;  %v128_v14 = vld [vmem:[#allocation7 + $0x30] sm:$0xff]  ;;  %v127_v15 = vld [vmem:[#allocation7 + $0x28] sm:$0xff]  ;;  %v126_v16 = vld [vmem:[#allocation7 + $0x20] sm:$0xff] }
  0x19   :  { %144 = vmatpush.msra.mxu1 %v135_v5  ;;  %v125_v17 = vld [vmem:[#allocation7 + $0x18] sm:$0xff]  ;;  %v124_v18 = vld [vmem:[#allocation7 + $0x10] sm:$0xff]  ;;  %v123_v19 = vld [vmem:[#allocation7 + $0x8] sm:$0xff] }
  0x1a   :  { %116 = vmatpush.msra.mxu0 %v89_v6  ;;  %v122_v20 = vld [vmem:[#allocation7] sm:$0xff]  ;;  %v178_v21 = vld [vmem:[#allocation8 + $0x78] sm:$0xff]  ;;  %v177_v22 = vld [vmem:[#allocation8 + $0x70] sm:$0xff] }
  0x1b   :  { %223 = vmatmul.msk.f32.vlgmr.msra.gmra.mxu0 %vm97_vm0, %v88_v7  ;;  %145 = vmatpush.msra.mxu1 %v134_v8  ;;  %v176_v23 = vld [vmem:[#allocation8 + $0x68] sm:$0xff]  ;;  %v175_v24 = vld [vmem:[#allocation8 + $0x60] sm:$0xff]  ;;  %v174_v25 = vld [vmem:[#allocation8 + $0x58] sm:$0xff] }
  0x1c   :  { %183 = vmatpush.msra.mxu2 %v178_v21  ;;  %v173_v26 = vld [vmem:[#allocation8 + $0x50] sm:$0xff]  ;;  %v172_v27 = vld [vmem:[#allocation8 + $0x48] sm:$0xff]  ;;  %v171_v28 = vld [vmem:[#allocation8 + $0x40] sm:$0xff] }
  0x1d   :  { %146 = vmatpush.msra.mxu1 %v133_v9  ;;  %v170_v29 = vld [vmem:[#allocation8 + $0x38] sm:$0xff]  ;;  %v169_v30 = vld [vmem:[#allocation8 + $0x30] sm:$0xff]  ;;  %v168_v31 = vld [vmem:[#allocation8 + $0x28] sm:$0xff] }
  0x1e   :  { %184 = vmatpush.msra.mxu2 %v177_v22  ;;  %v167_v32 = vld [vmem:[#allocation8 + $0x20] sm:$0xff]  ;;  %v166_v33 = vld [vmem:[#allocation8 + $0x18] sm:$0xff]  ;;  %v165_v38 = vld [vmem:[#allocation8 + $0x10] sm:$0xff] }
  0x1f   :  { %147 = vmatpush.msra.mxu1 %v132_v10  ;;  %v231_v34 = vld [vmem:[%s435_s2] ss:$0 sm:$0xff]  ;;  %v164_v39 = vld [vmem:[#allocation8 + $0x8] sm:$0xff]  ;;  %v163_v40 = vld [vmem:[#allocation8] sm:$0xff] }
  0x20   :  { %185 = vmatpush.msra.mxu2 %v176_v23  ;;  %v232_v41 = vld [vmem:[%s437_s4] ss:$0 sm:$0xff] }
  0x21   :  { %148 = vmatpush.msra.mxu1 %v131_v11  ;;  %v233_v45 = vld [vmem:[%s439_s6] ss:$0 sm:$0xff] }
  0x22   :  { %186 = vmatpush.msra.mxu2 %v175_v24 }
  0x23   :  { %149 = vmatpush.msra.mxu1 %v130_v12 }
  0x24   :  { %187 = vmatpush.msra.mxu2 %v174_v25 }
  0x25   :  { %150 = vmatpush.msra.mxu1 %v129_v13 }
  0x26   :  { %188 = vmatpush.msra.mxu2 %v173_v26 }
  0x27   :  { %151 = vmatpush.msra.mxu1 %v128_v14 }
  0x28   :  { %189 = vmatpush.msra.mxu2 %v172_v27 }
  0x29   :  { %152 = vmatpush.msra.mxu1 %v127_v15 }
  0x2a   :  { %190 = vmatpush.msra.mxu2 %v171_v28 }
  0x2b   :  { %153 = vmatpush.msra.mxu1 %v126_v16 }
  0x2c   :  { %191 = vmatpush.msra.mxu2 %v170_v29 }
  0x2d   :  { %154 = vmatpush.msra.mxu1 %v125_v17 }
  0x2e   :  { %192 = vmatpush.msra.mxu2 %v169_v30 }
  0x2f   :  { %155 = vmatpush.msra.mxu1 %v124_v18 }
  0x30   :  { %193 = vmatpush.msra.mxu2 %v168_v31 }
  0x31   :  { %156 = vmatpush.msra.mxu1 %v123_v19 }
  0x32   :  { %194 = vmatpush.msra.mxu2 %v167_v32 }
  0x33   :  { %157 = vmatpush.msra.mxu1 %v122_v20 }
  0x34   :  { %195 = vmatpush.msra.mxu2 %v166_v33 }
  0x36   :  { %196 = vmatpush.msra.mxu2 %v165_v38 }
  0x38   :  { %197 = vmatpush.msra.mxu2 %v164_v39 }
  0x3a   :  { %198 = vmatpush.msra.mxu2 %v163_v40 }
  0x98   :  { %v118_v35 = vpop.f32.mrf.mxu0 }
  0x99   :  { %v119_v36 = vadd.f32 %v231_v34, %v118_v35 }
  0x9b   :  { %v121_v37 = vmax.f32 %v119_v36, 0.0 }
  0x9d   :  { %158 = vmatmul.f32.vlgmr.msra.gmra.mxu1 %v121_v37 }
 0x11a   :  { %v159_v42 = vpop.f32.mrf.mxu1 }
 0x11b   :  { %v160_v43 = vadd.f32 %v232_v41, %v159_v42 }
 0x11d   :  { %v162_v44 = vmax.f32 %v160_v43, 0.0 }
 0x11f   :  { %199 = vmatmul.f32.vlgmr.msra.gmra.mxu2 %v162_v44 }
 0x1a2   :  { %v200_v46 = vpop.f32.mrf.mxu2 }
 0x1a3   :  { %v201_v47 = vadd.f32 %v233_v45, %v200_v46 }
 0x1a5   :  { %203 = vst [vmem:[#allocation10] sm:$0xff] %v201_v47 }
 0x1a6   :  { %214 = dma.vmem_to_hbm [thread:$0]  %s210_s25, 128, %s212_s28, [#allocation4]  }
 0x1a7   :  { %360 = dma.done.wait [#allocation4], 128  }
 0x1a8   :  { %361 = vsyncadd [#allocation4], 4294967168 }
 0x1a9   :  { %219 = vsyncpa [#allocation3], 1 }
 0x1aa   :  { %220 = vsyncpa [#allocation6], 1 }
 0x1ab   :  { %221 = vsyncpa [#allocation9], 1 }
 0x1ac   :  { %222 = vsyncpa [#allocation4], 1 }

</bundles_post_ra>
